<compile_context>
chip_gen: v6e
topology: v6e:2x2x1
jax: 0.10.0
libtpu: 0.0.40
codegen_flags: <defaults>
</compile_context>

<pallas_src>
import jax
import jax.numpy as jnp
from jax.experimental import pallas as pl
from jax.experimental.pallas import tpu as pltpu

LANE = 128  # vreg lane width


def _cdiv(a, b):
    return -(-a // b)


def linear1x1_kernel(x_ref, w_ref, b_ref, o_ref):
    # y = x * w + b  -- pure VPU work, scalars read from SMEM (f32).
    w = w_ref[0, 0]
    b = b_ref[0, 0]
    o_ref[...] = (x_ref[...] * w + b).astype(o_ref.dtype)


def linear_pallas(x, weight, bias, *, max_rows_per_tile=8192):
    """nn.Linear(1, 1) forward: x is (..., 1); returns (..., 1)."""
    assert weight.shape == (1, 1) and bias.shape == (1,)
    orig_shape = x.shape
    dtype = x.dtype
    itemsize = jnp.dtype(dtype).itemsize
    sublane = 32 // itemsize  # 8 rows for f32, 16 for bf16, 32 for int8/fp8
    n = x.size

    # Lane-dense view: (rows, 128) slab so stores are unmasked full-width vst.
    rows = _cdiv(n, LANE)
    needs_pad = (rows * LANE != n)
    if needs_pad:
        # Ragged tail: pad only up to the next 128-element row.
        xf = jnp.pad(x.reshape(-1), (0, rows * LANE - n)).reshape(rows, LANE)
    else:
        # Fast path: free reshape, no pad / no trailing slice (pure view).
        xf = x.reshape(rows, LANE)

    # Tile selection: biggest sublane-aligned tile that fits the VMEM budget,
    # but keep >=2 grid steps for meaningful sizes (v7x has 2 TensorCores).
    cap = max(sublane, (max_rows_per_tile // sublane) * sublane)
    if rows > cap:
        rows_tile = cap
    elif rows >= 2 * sublane:
        rows_tile = _cdiv(_cdiv(rows, 2), sublane) * sublane
    else:
        rows_tile = rows  # full-extent block (allowed even if < sublane)

    grid = (_cdiv(rows, rows_tile),)

    # Weight / bias as exact f32 SMEM scalars (no padded VMEM tile, no
    # broadcast materialization, no in-kernel transpose; W^T == W for 1x1).
    w2d = weight.astype(jnp.float32).reshape(1, 1)
    b2d = bias.astype(jnp.float32).reshape(1, 1)

    n_pad = rows * LANE
    cost = pl.CostEstimate(
        flops=2 * n_pad,
        transcendentals=0,
        bytes_accessed=2 * n_pad * itemsize,
    )

    out = pl.pallas_call(
        linear1x1_kernel,
        out_shape=jax.ShapeDtypeStruct((rows, LANE), dtype),
        grid=grid,
        in_specs=[
            pl.BlockSpec((rows_tile, LANE), lambda i: (i, 0)),
            pl.BlockSpec(memory_space=pltpu.MemorySpace.SMEM),  # weight scalar
            pl.BlockSpec(memory_space=pltpu.MemorySpace.SMEM),  # bias scalar
        ],
        out_specs=pl.BlockSpec((rows_tile, LANE), lambda i: (i, 0)),
        compiler_params=pltpu.CompilerParams(
            dimension_semantics=("parallel",),
            vmem_limit_bytes=32 << 20,  # v5e default is 16 MiB; 4 MiB tiles need more
        ),
        cost_estimate=cost,
    )(xf, w2d, b2d)

    if needs_pad:
        return out.reshape(-1)[:n].reshape(orig_shape)
    return out.reshape(orig_shape)


if __name__ == "__main__":
    # Deterministic parameters matching the PyTorch module's __init__.
    weight = jnp.full((1, 1), 2.0, dtype=jnp.float32)  # nn.Linear(1,1).weight = 2.0
    bias = jnp.full((1,), 1.0, dtype=jnp.float32)      # nn.Linear(1,1).bias   = 1.0

    key = jax.random.PRNGKey(0)

    # Toy-size check (B=8), matching the module's expected (batch, 1) input.
    x = jax.random.normal(key, (8, 1), dtype=jnp.float32)
    out = jax.block_until_ready(linear_pallas(x, weight, bias))
    ref = x * 2.0 + 1.0
    assert out.shape == (8, 1)
    assert jnp.allclose(out, ref, atol=1e-6), (out, ref)

    # Ragged batch (not a multiple of 128): exercises tail pad / unpad path.
    x2 = jax.random.normal(jax.random.PRNGKey(1), (300, 1), dtype=jnp.float32)
    out2 = jax.block_until_ready(linear_pallas(x2, weight, bias))
    assert out2.shape == (300, 1)
    assert jnp.allclose(out2, x2 * 2.0 + 1.0, atol=1e-6)

    # Lane-divisible batch: exercises the no-pad fast path and a 2-step grid.
    x3 = jax.random.normal(jax.random.PRNGKey(2), (2048, 1), dtype=jnp.float32)
    out3 = jax.block_until_ready(linear_pallas(x3, weight, bias))
    assert out3.shape == (2048, 1)
    assert jnp.allclose(out3, x3 * 2.0 + 1.0, atol=1e-6)

    print("KERNEL_OK")
</pallas_src>

<mosaic_0001>
module attributes {stable_mosaic.version = 11 : i64} {
  func.func @linear1x1_kernel(%arg0: i32, %arg1: memref<1x128xf32, #tpu.memory_space<vmem>>, %arg2: memref<1x1xf32, #tpu.memory_space<smem>>, %arg3: memref<1x1xf32, #tpu.memory_space<smem>>, %arg4: memref<1x128xf32, #tpu.memory_space<vmem>>) attributes {dimension_semantics = [#tpu.dimension_semantics<parallel>], iteration_bounds = array<i64: 1>, scalar_prefetch = 0 : i64, scratch_operands = 0 : i64, tpu.core_type = #tpu.core_type<tc>, window_params = [{transform_indices = @transform_0, window_bounds = array<i64: 1, 128>}, {transform_indices = @transform_1, window_bounds = array<i64: 1, 1>}, {transform_indices = @transform_2, window_bounds = array<i64: 1, 1>}, {transform_indices = @transform_3, window_bounds = array<i64: 1, 128>}]} {
    %c0 = arith.constant 0 : index
    %c0_0 = arith.constant 0 : index
    %0 = memref.load %arg2[%c0, %c0_0] : memref<1x1xf32, #tpu.memory_space<smem>>
    %c0_1 = arith.constant 0 : index
    %c0_2 = arith.constant 0 : index
    %1 = memref.load %arg3[%c0_1, %c0_2] : memref<1x1xf32, #tpu.memory_space<smem>>
    %c0_3 = arith.constant 0 : index
    %c0_4 = arith.constant 0 : index
    %2 = vector.load %arg1[%c0_3, %c0_4] : memref<1x128xf32, #tpu.memory_space<vmem>>, vector<1x128xf32>
    %3 = vector.broadcast %0 : f32 to vector<1x128xf32>
    %4 = arith.mulf %2, %3 : vector<1x128xf32>
    %5 = vector.broadcast %1 : f32 to vector<1x128xf32>
    %6 = arith.addf %4, %5 : vector<1x128xf32>
    %c0_5 = arith.constant 0 : index
    %c0_6 = arith.constant 0 : index
    %7 = vector.load %arg4[%c0_5, %c0_6] : memref<1x128xf32, #tpu.memory_space<vmem>>, vector<1x128xf32>
    tpu.vector_store %arg4[%c0_5, %c0_6], %6 {strides = array<i32>} : memref<1x128xf32, #tpu.memory_space<vmem>>, vector<1x128xf32>,
    return
  }
  func.func @transform_0(%arg0: i32) -> (i32, i32) {
    %c0_i32 = arith.constant 0 : i32
    %c0_i32_0 = arith.constant 0 : i32
    return %arg0, %c0_i32 : i32, i32
  }
  func.func @transform_1(%arg0: i32) -> (i32, i32) {
    %c0_i32 = arith.constant 0 : i32
    %c0_i32_0 = arith.constant 0 : i32
    %c0_i32_1 = arith.constant 0 : i32
    return %c0_i32, %c0_i32_0 : i32, i32
  }
  func.func @transform_2(%arg0: i32) -> (i32, i32) {
    %c0_i32 = arith.constant 0 : i32
    %c0_i32_0 = arith.constant 0 : i32
    %c0_i32_1 = arith.constant 0 : i32
    return %c0_i32, %c0_i32_0 : i32, i32
  }
  func.func @transform_3(%arg0: i32) -> (i32, i32) {
    %c0_i32 = arith.constant 0 : i32
    %c0_i32_0 = arith.constant 0 : i32
    return %arg0, %c0_i32 : i32, i32
  }
}

</mosaic_0001>

<bundles_post_ra>
// kernel: tpu_custom_call.1
= control target key start
LH: loop header
LB: loop body
LE: loop exit
PB: predicated region body
PF: predicated region fallthrough
CT: control target
= control target key end

     0   :  { %s95_s0 = inlined_call_operand.vmem [shape: f32[1,128], index: 0, kind: input, shape index: {}]   ;;  %s96_s1 = inlined_call_operand.<no memory space> [shape: f32[1,1], index: 1, kind: input, shape index: {}]   ;;  %s97_s2 = inlined_call_operand.<no memory space> [shape: f32[1,1], index: 2, kind: input, shape index: {}]   ;;  %s98_s3 = inlined_call_operand.hbm [shape: f32[1,128], index: 3, kind: output, shape index: {}]  }
   0x1   :  { %v19_v0 = vld [vmem:[%s95_s0] sm:$0x1]  ;;  %v20_v1 = vstv %s96_s1  ;;  %v22_v2 = vstv %s97_s2 }
   0x2   :  { %10 = vsyncpa [#allocation5], 0  ;;  %v21_v3 = vmul.f32 %v20_v1, %v19_v0  ;;  %s62_s18 = smov [#allocation4]  }
   0x3   :  { %s31_s19 = sshll.u32 %s62_s18, 4  ;;  %s32_s19 = int_to_ptr.vmem [resolvable:$true] %s31_s19 }
   0x4   :  { %v23_v4 = vadd.f32 %v22_v2, %v21_v3  ;;  %s40_s20 = scalar_lea.vmem %s32_s19, 16  ;;  %s44_s21 = scalar_lea.vmem %s32_s19, 32 }
   0x5   :  { %p41_p0 = scmp.ne.s32.totalorder %s32_s19, %s40_s20  ;;  %p45_p1 = scmp.lt.s32.totalorder %s32_s19, %s32_s19 }
   0x6   :  { %24 = vst [vmem:[#allocation4] sm:$0x1] %v23_v4  ;;  %p46_p2 = scmp.lt.s32.totalorder %s44_s21, %s40_s20 }
   0x8   :  { %p47_p3 = por %p46_p2, %p45_p1 }
   0xa   :  { %p48_p4 = pnand %p47_p3, %p41_p0 }
   0xc   :  { %51 = shalt.err (!%p48_p4)
}
   0xd   :  { %34 = dma.vmem_to_hbm [thread:$0]  %s32_s19, 16, %s98_s3, [#allocation5]  }
   0xe   :  { %60 = dma.done.wait [#allocation5], 16  }
   0xf   :  { %61 = vsyncadd [#allocation5], 4294967280 }
  0x10   :  { %38 = vsyncpa [#allocation5], 1 }

</bundles_post_ra>
